<compile_context>
chip_gen: v5e
topology: v5e:2x2
jax: 0.10.0
libtpu: 0.0.40
codegen_flags: <defaults>
</compile_context>

<pallas_src>
import jax
import jax.numpy as jnp
from jax.experimental import pallas as pl
from jax.experimental.pallas import tpu as pltpu

EPS = 1e-6
LANES = 128
SUBLANES = 8
MAX_TILE_ROWS = 4096   # 4096 x 128 f32 = 2 MiB / input / buffer; 12 MiB double-buffered


def _round_up(x, m):
    return ((x + m - 1) // m) * m


def _detect_cores():
    """Return (num_tensorcores_to_use, prefer_core_parallel)."""
    try:
        kind = jax.devices()[0].device_kind.lower()
    except Exception:
        return 1, False
    if "v7" in kind or "7x" in kind:
        return 2, True            # v7x: 2 TCs per chip, request CORE_PARALLEL
    if any(s in kind for s in ("v3", "v4", "v5p")):
        return 2, False           # megacore chips: plain "parallel" splits
    return 1, False               # v5e / v6e: single TensorCore


def _make_kernel(tile_rows, blocks_per_core, rows, need_mask):
    def kernel(yp_ref, yt_ref, w_ref, num_ref, den_ref):
        c = pl.program_id(0)   # core (parallel) axis
        i = pl.program_id(1)   # reduction (arbitrary) axis

        @pl.when(i == 0)
        def _():
            num_ref[...] = jnp.zeros_like(num_ref)
            den_ref[...] = jnp.zeros_like(den_ref)

        # In-kernel upcast: bf16/f16 inputs stream at half the HBM bytes.
        yp = jnp.maximum(yp_ref[...].astype(jnp.float32), EPS)   # clamp(y_pred, min=eps)
        yt = yt_ref[...].astype(jnp.float32)
        w = w_ref[...].astype(jnp.float32)

        log_diff = jnp.log1p(yp) - jnp.log1p(yt)
        num_c = w * log_diff * log_diff                           # w * log_diff**2
        den_c = w

        def _accum(nc, dc):
            # vreg-shaped accumulation: pure VPU adds across (8,128) slabs;
            # the single cross-lane reduce happens once in the wrapper.
            num_ref[0] += nc.reshape(tile_rows // SUBLANES, SUBLANES, LANES).sum(axis=0)
            den_ref[0] += dc.reshape(tile_rows // SUBLANES, SUBLANES, LANES).sum(axis=0)

        if need_mask:
            row0 = (c * blocks_per_core + i) * tile_rows

            # Fully in-bounds block: unmasked hot path.
            @pl.when(row0 + tile_rows <= rows)
            def _():
                _accum(num_c, den_c)

            # Partial block straddling the logical end: mask garbage rows.
            @pl.when(jnp.logical_and(row0 < rows, row0 + tile_rows > rows))
            def _():
                local = jax.lax.broadcasted_iota(jnp.int32, (tile_rows, LANES), 0)
                valid = (row0 + local) < rows
                _accum(jnp.where(valid, num_c, 0.0),
                       jnp.where(valid, den_c, 0.0))

            # Fully-OOB clamped re-read blocks (row0 >= rows): skip entirely.
        else:
            _accum(num_c, den_c)

    return kernel


def nwrmsle_loss(y_pred, y_true, w):
    """Pallas TPU implementation of NWRMSLELoss.forward. Returns a scalar."""
    def _prep(x):
        x = jnp.asarray(x)
        if not jnp.issubdtype(x.dtype, jnp.floating):
            x = x.astype(jnp.float32)
        elif x.dtype == jnp.float64:
            x = x.astype(jnp.float32)
        return x.reshape(-1)

    y_pred, y_true, w = _prep(y_pred), _prep(y_true), _prep(w)
    n = y_pred.shape[0]

    num_cores, prefer_core_parallel = _detect_cores()

    # Sublane alignment for the narrowest dtype present (8 rows for f32,
    # 16 for bf16/f16, 32 for 8-bit).
    itemsize = min(a.dtype.itemsize for a in (y_pred, y_true, w))
    row_align = SUBLANES * max(1, 4 // itemsize)

    # Pad only up to the next aligned slab (no-op when already aligned).
    n_pad = _round_up(n, row_align * LANES)
    if n_pad != n:
        pad = n_pad - n
        y_pred = jnp.pad(y_pred, (0, pad), constant_values=1.0)  # log1p(1)-log1p(1)=0
        y_true = jnp.pad(y_true, (0, pad), constant_values=1.0)
        w = jnp.pad(w, (0, pad), constant_values=0.0)            # zero weight

    rows = n_pad // LANES
    y_pred = y_pred.reshape(rows, LANES)
    y_true = y_true.reshape(rows, LANES)
    w = w.reshape(rows, LANES)

    tile_rows = min(MAX_TILE_ROWS, _round_up(pl.cdiv(rows, num_cores), row_align))
    blocks_total = pl.cdiv(rows, tile_rows)
    blocks_per_core = pl.cdiv(blocks_total, num_cores)
    need_mask = (num_cores * blocks_per_core * tile_rows) != rows
    need_clamp = (num_cores * blocks_per_core) > blocks_total

    if need_clamp:
        # Overhang block slots re-read the last valid block; their
        # contribution is skipped inside the kernel.
        def in_map(c, i):
            return (jnp.minimum(c * blocks_per_core + i, blocks_total - 1), 0)
    else:
        def in_map(c, i):
            return (c * blocks_per_core + i, 0)

    tile_spec = pl.BlockSpec((tile_rows, LANES), in_map)
    out_spec = pl.BlockSpec((1, SUBLANES, LANES), lambda c, i: (c, 0, 0))

    kernel = _make_kernel(tile_rows, blocks_per_core, rows, need_mask)

    def _call(dim_sems):
        out = pl.pallas_call(
            kernel,
            out_shape=(
                jax.ShapeDtypeStruct((num_cores, SUBLANES, LANES), jnp.float32),
                jax.ShapeDtypeStruct((num_cores, SUBLANES, LANES), jnp.float32),
            ),
            grid_spec=pltpu.PrefetchScalarGridSpec(
                num_scalar_prefetch=0,
                grid=(num_cores, blocks_per_core),
                in_specs=[tile_spec, tile_spec, tile_spec],
                out_specs=(out_spec, out_spec),
            ),
            compiler_params=pltpu.CompilerParams(dimension_semantics=dim_sems),
        )(y_pred, y_true, w)
        return jax.block_until_ready(out)

    if num_cores > 1 and prefer_core_parallel:
        try:
            num_p, den_p = _call((pltpu.CORE_PARALLEL, pltpu.ARBITRARY))
        except Exception:
            # Fallback if CORE_PARALLEL lowering is unavailable on this build.
            num_p, den_p = _call((pltpu.PARALLEL, pltpu.ARBITRARY))
    elif num_cores > 1:
        num_p, den_p = _call((pltpu.PARALLEL, pltpu.ARBITRARY))
    else:
        num_p, den_p = _call((pltpu.ARBITRARY, pltpu.ARBITRARY))

    # Tiny final reduce + sqrt in plain XLA (per-core (8,128) partials).
    num = jnp.sum(num_p)
    den = jnp.sum(den_p)
    return jnp.sqrt(num / den)


def _reference(y_pred, y_true, w):
    y_pred = jnp.maximum(jnp.asarray(y_pred, jnp.float32), EPS)
    log_diff = jnp.log(y_pred + 1.0) - jnp.log(jnp.asarray(y_true, jnp.float32) + 1.0)
    num = jnp.sum(jnp.asarray(w, jnp.float32) * log_diff**2)
    den = jnp.sum(jnp.asarray(w, jnp.float32))
    return jnp.sqrt(num / den)


if __name__ == "__main__":
    key = jax.random.PRNGKey(0)
    k1, k2, k3 = jax.random.split(key, 3)

    shape = (2, 4, 16, 16)  # NCHW-style example input
    y_pred = jax.random.uniform(k1, shape, jnp.float32, minval=0.0, maxval=10.0)
    y_true = jax.random.uniform(k2, shape, jnp.float32, minval=0.0, maxval=10.0)
    w = jax.random.uniform(k3, shape, jnp.float32, minval=0.1, maxval=2.0)

    loss = jax.block_until_ready(nwrmsle_loss(y_pred, y_true, w))
    ref = jax.block_until_ready(_reference(y_pred, y_true, w))
    assert jnp.allclose(loss, ref, rtol=1e-5, atol=1e-6), (loss, ref)

    # Also exercise a non-aligned size (partial-block mask path).
    n2 = 8 * 128 * 3 + 37
    yp2 = jax.random.uniform(k1, (n2,), jnp.float32, minval=0.0, maxval=10.0)
    yt2 = jax.random.uniform(k2, (n2,), jnp.float32, minval=0.0, maxval=10.0)
    w2 = jax.random.uniform(k3, (n2,), jnp.float32, minval=0.1, maxval=2.0)
    loss2 = jax.block_until_ready(nwrmsle_loss(yp2, yt2, w2))
    ref2 = jax.block_until_ready(_reference(yp2, yt2, w2))
    assert jnp.allclose(loss2, ref2, rtol=1e-5, atol=1e-6), (loss2, ref2)

    print("KERNEL_OK")
</pallas_src>

<mosaic_0001>
module attributes {stable_mosaic.version = 11 : i64} {
  func.func @kernel(%arg0: i32, %arg1: i32, %arg2: memref<16x128xf32, #tpu.memory_space<vmem>>, %arg3: memref<16x128xf32, #tpu.memory_space<vmem>>, %arg4: memref<16x128xf32, #tpu.memory_space<vmem>>, %arg5: memref<1x8x128xf32, #tpu.memory_space<vmem>>, %arg6: memref<1x8x128xf32, #tpu.memory_space<vmem>>) attributes {dimension_semantics = [#tpu.dimension_semantics<arbitrary>, #tpu.dimension_semantics<arbitrary>], iteration_bounds = array<i64: 1, 1>, scalar_prefetch = 0 : i64, scratch_operands = 0 : i64, tpu.core_type = #tpu.core_type<tc>, window_params = [{transform_indices = @transform_0, window_bounds = array<i64: 16, 128>}, {transform_indices = @transform_1, window_bounds = array<i64: 16, 128>}, {transform_indices = @transform_2, window_bounds = array<i64: 16, 128>}, {transform_indices = @transform_3, window_bounds = array<i64: 1, 8, 128>}, {transform_indices = @transform_4, window_bounds = array<i64: 1, 8, 128>}]} {
    %c0_i32 = arith.constant 0 : i32
    %0 = arith.cmpi eq, %arg1, %c0_i32 : i32
    %1 = arith.extui %0 : i1 to i32
    %c0_i32_0 = arith.constant 0 : i32
    %2 = arith.cmpi ne, %1, %c0_i32_0 : i32
    scf.if %2 {
      %cst_20 = arith.constant 0.000000e+00 : f32
      %29 = vector.broadcast %cst_20 : f32 to vector<1x8x128xf32>
      %c0_21 = arith.constant 0 : index
      %c0_22 = arith.constant 0 : index
      %c0_23 = arith.constant 0 : index
      %30 = vector.load %arg5[%c0_21, %c0_22, %c0_23] : memref<1x8x128xf32, #tpu.memory_space<vmem>>, vector<1x8x128xf32>
      tpu.vector_store %arg5[%c0_21, %c0_22, %c0_23], %29 {strides = array<i32>} : memref<1x8x128xf32, #tpu.memory_space<vmem>>, vector<1x8x128xf32>,
      %cst_24 = arith.constant 0.000000e+00 : f32
      %31 = vector.broadcast %cst_24 : f32 to vector<1x8x128xf32>
      %c0_25 = arith.constant 0 : index
      %c0_26 = arith.constant 0 : index
      %c0_27 = arith.constant 0 : index
      %32 = vector.load %arg6[%c0_25, %c0_26, %c0_27] : memref<1x8x128xf32, #tpu.memory_space<vmem>>, vector<1x8x128xf32>
      tpu.vector_store %arg6[%c0_25, %c0_26, %c0_27], %31 {strides = array<i32>} : memref<1x8x128xf32, #tpu.memory_space<vmem>>, vector<1x8x128xf32>,
    } else {
    }
    %c0 = arith.constant 0 : index
    %c0_1 = arith.constant 0 : index
    %3 = vector.load %arg2[%c0, %c0_1] : memref<16x128xf32, #tpu.memory_space<vmem>>, vector<16x128xf32>
    %cst = arith.constant 9.99999997E-7 : f32
    %4 = vector.broadcast %cst : f32 to vector<16x128xf32>
    %5 = arith.maximumf %3, %4 : vector<16x128xf32>
    %c0_2 = arith.constant 0 : index
    %c0_3 = arith.constant 0 : index
    %6 = vector.load %arg3[%c0_2, %c0_3] : memref<16x128xf32, #tpu.memory_space<vmem>>, vector<16x128xf32>
    %c0_4 = arith.constant 0 : index
    %c0_5 = arith.constant 0 : index
    %7 = vector.load %arg4[%c0_4, %c0_5] : memref<16x128xf32, #tpu.memory_space<vmem>>, vector<16x128xf32>
    %8 = math.log1p %5 : vector<16x128xf32>
    %9 = math.log1p %6 : vector<16x128xf32>
    %10 = arith.subf %8, %9 : vector<16x128xf32>
    %11 = arith.mulf %7, %10 : vector<16x128xf32>
    %12 = arith.mulf %11, %10 : vector<16x128xf32>
    %c0_6 = arith.constant 0 : index
    %c0_7 = arith.constant 0 : index
    %c0_8 = arith.constant 0 : index
    %13 = vector.load %arg5[%c0_6, %c0_7, %c0_8] : memref<1x8x128xf32, #tpu.memory_space<vmem>>, vector<1x8x128xf32>
    %14 = vector.shape_cast %13 : vector<1x8x128xf32> to vector<8x128xf32>
    %15 = vector.shape_cast %12 : vector<16x128xf32> to vector<2x8x128xf32>
    %cst_9 = arith.constant dense<0.000000e+00> : vector<8x128xf32>
    %16 = vector.multi_reduction <add>, %15, %cst_9 [0] : vector<2x8x128xf32> to vector<8x128xf32>
    %17 = arith.addf %14, %16 : vector<8x128xf32>
    %c0_10 = arith.constant 0 : index
    %c0_11 = arith.constant 0 : index
    %c0_12 = arith.constant 0 : index
    %18 = vector.load %arg5[%c0_10, %c0_11, %c0_12] : memref<1x8x128xf32, #tpu.memory_space<vmem>>, vector<1x8x128xf32>
    %19 = vector.shape_cast %18 : vector<1x8x128xf32> to vector<8x128xf32>
    %20 = vector.shape_cast %17 : vector<8x128xf32> to vector<1x8x128xf32>
    tpu.vector_store %arg5[%c0_10, %c0_11, %c0_12], %20 {strides = array<i32>} : memref<1x8x128xf32, #tpu.memory_space<vmem>>, vector<1x8x128xf32>,
    %c0_13 = arith.constant 0 : index
    %c0_14 = arith.constant 0 : index
    %c0_15 = arith.constant 0 : index
    %21 = vector.load %arg6[%c0_13, %c0_14, %c0_15] : memref<1x8x128xf32, #tpu.memory_space<vmem>>, vector<1x8x128xf32>
    %22 = vector.shape_cast %21 : vector<1x8x128xf32> to vector<8x128xf32>
    %23 = vector.shape_cast %7 : vector<16x128xf32> to vector<2x8x128xf32>
    %cst_16 = arith.constant dense<0.000000e+00> : vector<8x128xf32>
    %24 = vector.multi_reduction <add>, %23, %cst_16 [0] : vector<2x8x128xf32> to vector<8x128xf32>
    %25 = arith.addf %22, %24 : vector<8x128xf32>
    %c0_17 = arith.constant 0 : index
    %c0_18 = arith.constant 0 : index
    %c0_19 = arith.constant 0 : index
    %26 = vector.load %arg6[%c0_17, %c0_18, %c0_19] : memref<1x8x128xf32, #tpu.memory_space<vmem>>, vector<1x8x128xf32>
    %27 = vector.shape_cast %26 : vector<1x8x128xf32> to vector<8x128xf32>
    %28 = vector.shape_cast %25 : vector<8x128xf32> to vector<1x8x128xf32>
    tpu.vector_store %arg6[%c0_17, %c0_18, %c0_19], %28 {strides = array<i32>} : memref<1x8x128xf32, #tpu.memory_space<vmem>>, vector<1x8x128xf32>,
    return
  }
  func.func @transform_0(%arg0: i32, %arg1: i32) -> (i32, i32) {
    %c1_i32 = arith.constant 1 : i32
    %0 = arith.muli %arg0, %c1_i32 : i32
    %1 = arith.addi %0, %arg1 : i32
    %c0_i32 = arith.constant 0 : i32
    %c0_i32_0 = arith.constant 0 : i32
    return %1, %c0_i32 : i32, i32
  }
  func.func @transform_1(%arg0: i32, %arg1: i32) -> (i32, i32) {
    %c1_i32 = arith.constant 1 : i32
    %0 = arith.muli %arg0, %c1_i32 : i32
    %1 = arith.addi %0, %arg1 : i32
    %c0_i32 = arith.constant 0 : i32
    %c0_i32_0 = arith.constant 0 : i32
    return %1, %c0_i32 : i32, i32
  }
  func.func @transform_2(%arg0: i32, %arg1: i32) -> (i32, i32) {
    %c1_i32 = arith.constant 1 : i32
    %0 = arith.muli %arg0, %c1_i32 : i32
    %1 = arith.addi %0, %arg1 : i32
    %c0_i32 = arith.constant 0 : i32
    %c0_i32_0 = arith.constant 0 : i32
    return %1, %c0_i32 : i32, i32
  }
  func.func @transform_3(%arg0: i32, %arg1: i32) -> (i32, i32, i32) {
    %c0_i32 = arith.constant 0 : i32
    %c0_i32_0 = arith.constant 0 : i32
    %c0_i32_1 = arith.constant 0 : i32
    return %arg0, %c0_i32, %c0_i32_0 : i32, i32, i32
  }
  func.func @transform_4(%arg0: i32, %arg1: i32) -> (i32, i32, i32) {
    %c0_i32 = arith.constant 0 : i32
    %c0_i32_0 = arith.constant 0 : i32
    %c0_i32_1 = arith.constant 0 : i32
    return %arg0, %c0_i32, %c0_i32_0 : i32, i32, i32
  }
}

</mosaic_0001>

<bundles_post_ra>
// kernel: tpu_custom_call.1
= control target key start
LH: loop header
LB: loop body
LE: loop exit
PB: predicated region body
PF: predicated region fallthrough
CT: control target
= control target key end

     0   :  { %10 = vsyncpa [#allocation3], 0  ;;  %s387_s0 = inlined_call_operand.hbm [shape: f32[16,128], index: 0, kind: input, shape index: {}]   ;;  %s388_s1 = inlined_call_operand.hbm [shape: f32[16,128], index: 1, kind: input, shape index: {}]   ;;  %s389_s2 = inlined_call_operand.hbm [shape: f32[16,128], index: 2, kind: input, shape index: {}]   ;;  %s390_s3 = inlined_call_operand.hbm [shape: f32[1,8,128], index: 3, kind: output, shape index: {0}]   ;;  %s391_s4 = inlined_call_operand.hbm [shape: f32[1,8,128], index: 4, kind: output, shape index: {1}]  }
   0x1   :  { %11 = vsyncpa [#allocation6], 0 }
   0x2   :  { %12 = vsyncpa [#allocation4], 0 }
   0x3   :  { %13 = vsyncpa [#allocation10], 0  ;;  %s39_s17 = sshll.u32 %s388_s1, 4  ;;  %s325_s18 = smov [#allocation5]   ;;  %s40_s17 = int_to_ptr.hbm [resolvable:$true] %s39_s17 }
   0x4   :  { %s41_s19 = sshll.u32 %s325_s18, 4  ;;  %s22_s22 = sshll.u32 %s387_s0, 4  ;;  %s42_s19 = int_to_ptr.vmem [resolvable:$true] %s41_s19  ;;  %s23_s22 = int_to_ptr.hbm [resolvable:$true] %s22_s22 }
   0x5   :  { %s326_s23 = smov 128   ;;  %s327_s24 = smov 8  }
   0x6   :  { %47 = dma.hbm_to_vmem [thread:$0]  %s40_s17, 256, %s42_s19, [#allocation6], %s326_s23, %s326_s23, %s327_s24  }
   0x7   :  { %s328_s25 = smov [#allocation2]   ;;  %s56_s29 = sshll.u32 %s389_s2, 4  ;;  %s57_s29 = int_to_ptr.hbm [resolvable:$true] %s56_s29 }
   0x8   :  { %s24_s26 = sshll.u32 %s328_s25, 4  ;;  %s329_s1 = smov [#allocation7]   ;;  %s25_s26 = int_to_ptr.vmem [resolvable:$true] %s24_s26 }
   0x9   :  { %30 = dma.hbm_to_vmem [thread:$0]  %s23_s22, 256, %s25_s26, [#allocation3], %s326_s23, %s326_s23, %s327_s24  }
   0xa   :  { %s58_s30 = sshll.u32 %s329_s1, 4  ;;  %s59_s30 = int_to_ptr.vmem [resolvable:$true] %s58_s30 }
   0xb   :  { %64 = dma.hbm_to_vmem [thread:$0]  %s57_s29, 256, %s59_s30, [#allocation6], %s326_s23, %s326_s23, %s327_s24  }
   0xc   :  { %317 = dma.done.wait [#allocation3], 256  }
   0xd   :  { %318 = vsyncadd [#allocation3], 4294967040 }
   0xe   :  { %319 = dma.done.wait [#allocation6], 512  }
   0xf   :  { %320 = vsyncadd [#allocation6], 4294966784  ;;  %v89_v0 = vld [vmem:[#allocation2] sm:$0xff]  ;;  %v90_v1 = vld [vmem:[#allocation2 + $0x8] sm:$0xff]  ;;  %s330_s0 = smov [#allocation9]   ;;  %s165_s7 = sshll.u32 %s391_s4, 4  ;;  %s166_s7 = int_to_ptr.hbm [resolvable:$true] %s165_s7 }
  0x10   :  { %v93_v2 = vld [vmem:[#allocation5] sm:$0xff]  ;;  %v91_v3 = vmax.f32 %v89_v0, 1e-06  ;;  %v92_v4 = vmax.f32 %v90_v1, 1e-06  ;;  %v94_v5 = vld [vmem:[#allocation5 + $0x8] sm:$0xff] }
  0x11   :  { %v115_v6 = vadd.f32 1.0, %v93_v2  ;;  %v118_v7 = vmul.f32 -0.5, %v93_v2  ;;  %v124_v11 = vadd.f32 1.0, %v94_v5  ;;  %v121_v15 = vand.u32 2147483647, %v93_v2  ;;  %s366_s2 = sshll.u32 %s330_s0, 4  ;;  %s164_s2 = int_to_ptr.vmem [resolvable:$true] %s366_s2 }
  0x12   :  { %v97_v8 = vadd.f32 1.0, %v91_v3  ;;  %v100_v9 = vmul.f32 -0.5, %v91_v3  ;;  %v106_v10 = vadd.f32 1.0, %v92_v4  ;;  %v109_v12 = vmul.f32 -0.5, %v92_v4  ;;  %v95_v16 = vld [vmem:[#allocation7] sm:$0xff]  ;;  %v96_v17 = vld [vmem:[#allocation7 + $0x8] sm:$0xff] }
  0x13   :  { %189 = vlog2.f32 %v115_v6  ;;  %v119_v13 = vadd.f32 1.0, %v118_v7  ;;  %v103_v18 = vand.u32 2147483647, %v91_v3  ;;  %v127_v20 = vmul.f32 -0.5, %v94_v5  ;;  %s331_s4 = smov [#allocation8]   ;;  %s154_s11 = sshll.u32 %s390_s3, 4  ;;  %s155_s11 = int_to_ptr.hbm [resolvable:$true] %s154_s11 }
  0x14   :  { %191 = vlog2.f32 %v97_v8  ;;  %v101_v14 = vadd.f32 1.0, %v100_v9  ;;  %v110_v19 = vadd.f32 1.0, %v109_v12  ;;  %v112_v21 = vand.u32 2147483647, %v92_v4  ;;  %s152_s8 = sshll.u32 %s331_s4, 4  ;;  %s153_s8 = int_to_ptr.vmem [resolvable:$true] %s152_s8 }
  0x15   :  { %193 = vlog2.f32 %v106_v10  ;;  %v144_v22 = vadd.f32 %v96_v17, %v95_v16  ;;  %v120_v23 = vmul.f32 %v119_v13, %v93_v2  ;;  %v128_v24 = vadd.f32 1.0, %v127_v20 }
  0x16   :  { %195 = vlog2.f32 %v124_v11  ;;  %v130_v25 = vand.u32 2147483647, %v94_v5  ;;  %v102_v27 = vmul.f32 %v101_v14, %v91_v3  ;;  %vm371_vm0 = vcmp.lt.f32.partialorder %v121_v15, 0.0004427343 }
  0x17   :  { %vm376_vm1 = vcmp.lt.f32.partialorder %v103_v18, 0.0004427343  ;;  %v111_v31 = vmul.f32 %v110_v19, %v92_v4  ;;  %vm113_vm2 = vcmp.lt.f32.partialorder %v112_v21, 0.0004427343  ;;  %v129_v35 = vmul.f32 %v128_v24, %v94_v5  ;;  %146 = vst [vmem:[#allocation9] sm:$0xff] %v144_v22 }
  0x18   :  { %vm131_vm3 = vcmp.lt.f32.partialorder %v130_v25, 0.0004427343  ;;  %168 = dma.vmem_to_hbm [thread:$0]  %s164_s2, 128, %s166_s7, [#allocation10]  }
  0x19   :  { %v190_v26 = vpop.eup %189 }
  0x1a   :  { %v192_v29 = vpop.eup %191  ;;  %v117_v32 = vmul.f32 0.6931472, %v190_v26 }
  0x1b   :  { %v194_v33 = vpop.eup %193  ;;  %v99_v34 = vmul.f32 0.6931472, %v192_v29 }
  0x1c   :  { %v196_v36 = vpop.eup %195  ;;  %v108_v37 = vmul.f32 0.6931472, %v194_v33  ;;  %v123_v38 = vsel %vm371_vm0, %v120_v23, %v117_v32 }
  0x1d   :  { %v105_v39 = vsel %vm376_vm1, %v102_v27, %v99_v34  ;;  %v126_v40 = vmul.f32 0.6931472, %v196_v36 }
  0x1e   :  { %v114_v41 = vsel %vm113_vm2, %v111_v31, %v108_v37  ;;  %v133_v42 = vsub.f32 %v105_v39, %v123_v38 }
  0x1f   :  { %v132_v43 = vsel %vm131_vm3, %v129_v35, %v126_v40 }
  0x20   :  { %v134_v44 = vsub.f32 %v114_v41, %v132_v43  ;;  %v135_v45 = vmul.f32 %v133_v42, %v95_v16 }
  0x22   :  { %v136_v46 = vmul.f32 %v134_v44, %v96_v17  ;;  %v137_v47 = vmul.f32 %v135_v45, %v133_v42 }
  0x24   :  { %v138_v48 = vmul.f32 %v136_v46, %v134_v44 }
  0x26   :  { %v140_v49 = vadd.f32 %v138_v48, %v137_v47 }
  0x28   :  { %142 = vst [vmem:[#allocation8] sm:$0xff] %v140_v49 }
  0x29   :  { %157 = dma.vmem_to_hbm [thread:$0]  %s153_s8, 128, %s155_s11, [#allocation4]  }
  0x2a   :  { %321 = dma.done.wait [#allocation4], 128  }
  0x2b   :  { %322 = vsyncadd [#allocation4], 4294967168 }
  0x2c   :  { %323 = dma.done.wait [#allocation10], 128  }
  0x2d   :  { %324 = vsyncadd [#allocation10], 4294967168 }
  0x2e   :  { %177 = vsyncpa [#allocation3], 1 }
  0x2f   :  { %178 = vsyncpa [#allocation6], 1 }
  0x30   :  { %179 = vsyncpa [#allocation4], 1 }
  0x31   :  { %180 = vsyncpa [#allocation10], 1 }

</bundles_post_ra>
